<compile_context>
chip_gen: v5e
topology: v5e:2x2
jax: 0.10.0
libtpu: 0.0.40
codegen_flags: <defaults>
</compile_context>

<pallas_src>
import math
import functools

import jax
import jax.numpy as jnp
from jax import lax
from jax.experimental import pallas as pl
from jax.experimental.pallas import tpu as pltpu

MIN_NORM = 1e-15
EPS_F32 = 4e-3          # PoincareBall.eps[torch.float32]
ARTANH_CLAMP = 1e-15    # Artanh clamps its input to (-1+1e-15, 1-1e-15)

_VMEM_LIMIT_BYTES = 64 * 1024 * 1024       # safe ceiling on v5e/v6e/v7x
_PIPELINE_BUDGET_BYTES = 28 * 1024 * 1024  # what _pick_tm may spend on buffers/temps


def _round_up(v, m):
    return (v + m - 1) // m * m


def _artanh(x):
    x = jnp.clip(x, -1.0 + ARTANH_CLAMP, 1.0 - ARTANH_CLAMP)
    return 0.5 * (jnp.log1p(x) - jnp.log1p(-x))


def _hnn_kernel(c_ref, x_ref, w_ref, o_ref):
    c = c_ref[0]
    sqrt_c = jnp.sqrt(c)
    maxnorm = (1.0 - EPS_F32) / sqrt_c

    x = x_ref[...].astype(jnp.float32)            # (tm, Din) f32 for the epilogue
    w = w_ref[...]                                # (Dout, Din) f32 or bf16

    # ---- mobius_matvec core: mx = x @ W^T (feature axes contracted, MXU) ----
    mx = lax.dot_general(x.astype(w.dtype), w,
                         dimension_numbers=(((1,), (1,)), ((), ())),
                         preferred_element_type=jnp.float32)    # (tm, Dout) f32

    relu_mx = jnp.maximum(mx, 0.0)

    # Cross-lane reductions; everything below (until the final multiply) is
    # per-row (tm, 1) scalar math — VPU/EUP work on a single column.
    x_ss = jnp.sum(x * x, axis=-1, keepdims=True)
    mx_ss = jnp.sum(mx * mx, axis=-1, keepdims=True)
    relu_ss = jnp.sum(relu_mx * relu_mx, axis=-1, keepdims=True)

    x_norm = jnp.maximum(jnp.sqrt(x_ss), MIN_NORM)
    mx_norm_raw = jnp.sqrt(mx_ss)
    mx_norm = jnp.maximum(mx_norm_raw, MIN_NORM)
    relu_norm = jnp.sqrt(relu_ss)

    # mobius_matvec scale (>= 0); exactly zero for all-zero mx rows.
    s_mv = (jnp.tanh(mx_norm * pl.reciprocal(x_norm) * _artanh(sqrt_c * x_norm))
            * pl.reciprocal(sqrt_c * mx_norm))
    s_mv = jnp.where(mx_ss == 0.0, 0.0, s_mv)

    # proj(mv): ||mv|| = s_mv * ||mx||  (s_mv >= 0)
    mv_norm = jnp.maximum(s_mv * mx_norm_raw, MIN_NORM)
    s_p1 = jnp.where(mv_norm > maxnorm, maxnorm * pl.reciprocal(mv_norm), 1.0)

    # relu(logmap0(h)): the per-row scale is non-negative, so relu commutes
    # with it and is applied once to mx (relu_mx above).
    s_h = s_p1 * s_mv
    p_norm = jnp.maximum(s_h * mx_norm_raw, MIN_NORM)
    s_log = _artanh(sqrt_c * p_norm) * pl.reciprocal(sqrt_c * p_norm)
    s_xt = s_log * s_h                                           # xt = s_xt * relu(mx)

    # expmap0(xt)
    u_norm = jnp.maximum(s_xt * relu_norm, MIN_NORM)
    s_exp = jnp.tanh(sqrt_c * u_norm) * pl.reciprocal(sqrt_c * u_norm)
    s_g = s_exp * s_xt                                           # gamma = s_g * relu(mx)

    # final proj(gamma)
    g_norm = jnp.maximum(s_g * relu_norm, MIN_NORM)
    s_p2 = jnp.where(g_norm > maxnorm, maxnorm * pl.reciprocal(g_norm), 1.0)

    o_ref[...] = ((s_p2 * s_g) * relu_mx).astype(o_ref.dtype)


def _pick_tm(n, d_in_p, d_out_p, w_bytes_per_elem):
    """Largest row tile that keeps the (double-buffered) pipeline buffers plus
    kernel temporaries inside the VMEM budget.  Multiple of 8 (f32 sublane),
    128-aligned when large (MXU height)."""
    n8 = _round_up(max(n, 1), 8)
    w_bytes = 2 * d_in_p * d_out_p * w_bytes_per_elem             # resident W, 2 bufs
    # per-row bytes: double-buffered x and out tiles + ~6 f32 full-width temps
    per_row = 4 * (2 * d_in_p + 2 * d_out_p + 6 * max(d_in_p, d_out_p))
    avail = max(_PIPELINE_BUDGET_BYTES - w_bytes, 0)
    tm = min(1024, avail // per_row)
    tm = (int(tm) // 8) * 8
    if tm <= 8:
        # TODO(synk): weights this large want a K-split grid axis with a VMEM
        # accumulator (pl.when epilogue) instead of a fully resident W block.
        return 8
    if tm >= n8:
        return n8
    if tm >= 128:
        tm = (tm // 128) * 128
    return tm


@functools.partial(jax.jit, static_argnames=("tm", "use_bf16_matmul"))
def hnn_forward(x, weight, c, *, tm=None, use_bf16_matmul=False):
    """x: (N, D_in) f32, weight: (D_out, D_in) f32, c: (1,) f32 -> (N, D_out) f32."""
    n, d_in = x.shape
    d_out = weight.shape[0]

    # Lane-dense padding: features to multiples of 128, rows to a multiple of tm.
    d_in_p = _round_up(d_in, 128)
    d_out_p = _round_up(d_out, 128)

    w_dtype = jnp.bfloat16 if use_bf16_matmul else jnp.float32
    if tm is None:
        tm = _pick_tm(n, d_in_p, d_out_p, jnp.dtype(w_dtype).itemsize)
    else:
        tm = max(8, _round_up(int(tm), 8))
    n_p = _round_up(max(n, 1), tm)

    x_p = x
    if (n_p, d_in_p) != (n, d_in):
        x_p = jnp.pad(x, ((0, n_p - n), (0, d_in_p - d_in)))
    w_p = weight
    if (d_out_p, d_in_p) != (d_out, d_in):
        w_p = jnp.pad(weight, ((0, d_out_p - d_out), (0, d_in_p - d_in)))
    w_p = w_p.astype(w_dtype)

    grid = (n_p // tm,)
    out = pl.pallas_call(
        _hnn_kernel,
        out_shape=jax.ShapeDtypeStruct((n_p, d_out_p), x.dtype),
        grid_spec=pltpu.PrefetchScalarGridSpec(
            num_scalar_prefetch=0,
            grid=grid,
            in_specs=[
                pl.BlockSpec(memory_space=pltpu.SMEM),                 # c (scalar)
                pl.BlockSpec((tm, d_in_p), lambda i: (i, 0)),          # x row tile
                pl.BlockSpec((d_out_p, d_in_p), lambda i: (0, 0)),     # W (resident)
            ],
            out_specs=pl.BlockSpec((tm, d_out_p), lambda i: (i, 0)),
        ),
        compiler_params=pltpu.CompilerParams(
            dimension_semantics=("parallel",),
            vmem_limit_bytes=_VMEM_LIMIT_BYTES,
        ),
    )(c, x_p, w_p)
    return out[:n, :d_out]


def hnn_reference(x, weight, c):
    """Pure-JAX, unfused, divide-based translation of the PyTorch forward
    (use_bias=False)."""
    c = c[0]
    sqrt_c = jnp.sqrt(c)

    def proj(v):
        norm = jnp.maximum(jnp.linalg.norm(v, axis=-1, keepdims=True), MIN_NORM)
        maxnorm = (1.0 - EPS_F32) / sqrt_c
        return jnp.where(norm > maxnorm, v / norm * maxnorm, v)

    x_norm = jnp.maximum(jnp.linalg.norm(x, axis=-1, keepdims=True), MIN_NORM)
    mx = x @ weight.T
    mx_norm = jnp.maximum(jnp.linalg.norm(mx, axis=-1, keepdims=True), MIN_NORM)
    res_c = jnp.tanh(mx_norm / x_norm * _artanh(sqrt_c * x_norm)) * mx / (mx_norm * sqrt_c)
    mv = jnp.where(jnp.all(mx == 0.0, axis=-1, keepdims=True), 0.0, res_c)
    h = proj(mv)
    p_norm = jnp.maximum(jnp.linalg.norm(h, axis=-1, keepdims=True), MIN_NORM)
    xt = jnp.maximum((1.0 / sqrt_c) * _artanh(sqrt_c * p_norm) / p_norm * h, 0.0)
    u_norm = jnp.maximum(jnp.linalg.norm(xt, axis=-1, keepdims=True), MIN_NORM)
    return proj(jnp.tanh(sqrt_c * u_norm) * xt / (sqrt_c * u_norm))


if __name__ == "__main__":
    key = jax.random.PRNGKey(0)
    C_VAL = 1.0
    gain = math.sqrt(2.0)

    # One tile-aligned case and one ragged case (exercises the pad/slice path).
    for (N, IN_F, OUT_F) in [(16, 32, 32), (13, 20, 24)]:
        key, k_x, k_w = jax.random.split(key, 3)

        # Points well inside the Poincare ball (||x|| < 1/sqrt(c)).
        x = 0.1 * jax.random.normal(k_x, (N, IN_F), dtype=jnp.float32)

        # xavier_uniform_ with gain=sqrt(2): U(-a, a), a = gain*sqrt(6/(fan_in+fan_out))
        bound = gain * math.sqrt(6.0 / (IN_F + OUT_F))
        weight = jax.random.uniform(k_w, (OUT_F, IN_F), dtype=jnp.float32,
                                    minval=-bound, maxval=bound)
        c = jnp.array([C_VAL], dtype=jnp.float32)
        # TODO(synk): bias path (use_bias=True) not exercised — constructor default is False.

        ref = hnn_reference(x, weight, c)

        out = hnn_forward(x, weight, c)
        jax.block_until_ready(out)
        assert out.shape == (N, OUT_F)
        assert jnp.allclose(out, ref, atol=1e-5, rtol=1e-5), "f32 mismatch vs reference"

        # bf16 MXU inputs with f32 accumulation + f32 epilogue (looser tolerance).
        out_bf16 = hnn_forward(x, weight, c, use_bf16_matmul=True)
        jax.block_until_ready(out_bf16)
        assert jnp.allclose(out_bf16, ref, atol=2e-2, rtol=2e-2), "bf16 mismatch vs reference"

    print("KERNEL_OK")
</pallas_src>

<mosaic_0001>
module attributes {stable_mosaic.version = 11 : i64} {
  func.func @_hnn_kernel(%arg0: i32, %arg1: memref<1xf32, #tpu.memory_space<smem>>, %arg2: memref<16x128xf32, #tpu.memory_space<vmem>>, %arg3: memref<128x128xf32, #tpu.memory_space<vmem>>, %arg4: memref<16x128xf32, #tpu.memory_space<vmem>>) attributes {dimension_semantics = [#tpu.dimension_semantics<parallel>], iteration_bounds = array<i64: 1>, scalar_prefetch = 0 : i64, scratch_operands = 0 : i64, tpu.core_type = #tpu.core_type<tc>, window_params = [{transform_indices = @transform_0, window_bounds = array<i64: 1>}, {transform_indices = @transform_1, window_bounds = array<i64: 16, 128>}, {pipeline_mode = #tpu.pipeline_mode<synchronous>, transform_indices = @transform_2, window_bounds = array<i64: 128, 128>}, {transform_indices = @transform_3, window_bounds = array<i64: 16, 128>}]} {
    %c0 = arith.constant 0 : index
    %0 = memref.load %arg1[%c0] : memref<1xf32, #tpu.memory_space<smem>>
    %1 = math.sqrt %0 : f32
    %cst = arith.constant 0.995999991 : f32
    %2 = arith.divf %cst, %1 : f32
    %c0_0 = arith.constant 0 : index
    %c0_1 = arith.constant 0 : index
    %3 = vector.load %arg2[%c0_0, %c0_1] : memref<16x128xf32, #tpu.memory_space<vmem>>, vector<16x128xf32>
    %c0_2 = arith.constant 0 : index
    %c0_3 = arith.constant 0 : index
    %4 = vector.load %arg3[%c0_2, %c0_3] : memref<128x128xf32, #tpu.memory_space<vmem>>, vector<128x128xf32>
    %cst_4 = arith.constant dense<0.000000e+00> : vector<16x128xf32>
    %5 = tpu.matmul %3, %4, %cst_4 {dimension_numbers = #tpu.dot_dimension_numbers<[1], [1], [0], [0], [0, 0, 1, 0], [], []>} : vector<16x128xf32>, vector<128x128xf32>, vector<16x128xf32> -> vector<16x128xf32>
    %cst_5 = arith.constant 0.000000e+00 : f32
    %6 = vector.broadcast %cst_5 : f32 to vector<16x128xf32>
    %7 = arith.maximumf %5, %6 : vector<16x128xf32>
    %8 = arith.mulf %3, %3 : vector<16x128xf32>
    %cst_6 = arith.constant dense<0.000000e+00> : vector<16xf32>
    %9 = vector.multi_reduction <add>, %8, %cst_6 [1] : vector<16x128xf32> to vector<16xf32>
    %10 = vector.shape_cast %9 : vector<16xf32> to vector<16x1xf32>
    %11 = arith.mulf %5, %5 : vector<16x128xf32>
    %cst_7 = arith.constant dense<0.000000e+00> : vector<16xf32>
    %12 = vector.multi_reduction <add>, %11, %cst_7 [1] : vector<16x128xf32> to vector<16xf32>
    %13 = vector.shape_cast %12 : vector<16xf32> to vector<16x1xf32>
    %14 = arith.mulf %7, %7 : vector<16x128xf32>
    %cst_8 = arith.constant dense<0.000000e+00> : vector<16xf32>
    %15 = vector.multi_reduction <add>, %14, %cst_8 [1] : vector<16x128xf32> to vector<16xf32>
    %16 = vector.shape_cast %15 : vector<16xf32> to vector<16x1xf32>
    %17 = math.sqrt %10 : vector<16x1xf32>
    %cst_9 = arith.constant 1.000000e-15 : f32
    %18 = vector.broadcast %cst_9 : f32 to vector<16x1xf32>
    %19 = arith.maximumf %17, %18 : vector<16x1xf32>
    %20 = math.sqrt %13 : vector<16x1xf32>
    %cst_10 = arith.constant 1.000000e-15 : f32
    %21 = vector.broadcast %cst_10 : f32 to vector<16x1xf32>
    %22 = arith.maximumf %20, %21 : vector<16x1xf32>
    %23 = math.sqrt %16 : vector<16x1xf32>
    %24 = tpu.reciprocal %19 : vector<16x1xf32> -> vector<16x1xf32>
    %25 = arith.mulf %22, %24 : vector<16x1xf32>
    %26 = vector.broadcast %1 : f32 to vector<16x1xf32>
    %27 = arith.mulf %26, %19 : vector<16x1xf32>
    %cst_11 = arith.constant -1.000000e+00 : f32
    %cst_12 = arith.constant 1.000000e+00 : f32
    %28 = vector.broadcast %cst_11 : f32 to vector<16x1xf32>
    %29 = arith.maximumf %28, %27 : vector<16x1xf32>
    %30 = vector.broadcast %cst_12 : f32 to vector<16x1xf32>
    %31 = arith.minimumf %30, %29 : vector<16x1xf32>
    %32 = math.log1p %31 : vector<16x1xf32>
    %cst_13 = arith.constant 0.000000e+00 : f32
    %33 = vector.broadcast %cst_13 : f32 to vector<16x1xf32>
    %34 = arith.subf %33, %31 : vector<16x1xf32>
    %35 = math.log1p %34 : vector<16x1xf32>
    %36 = arith.subf %32, %35 : vector<16x1xf32>
    %cst_14 = arith.constant 5.000000e-01 : f32
    %37 = vector.broadcast %cst_14 : f32 to vector<16x1xf32>
    %38 = arith.mulf %37, %36 : vector<16x1xf32>
    %39 = arith.mulf %25, %38 : vector<16x1xf32>
    %40 = math.tanh %39 : vector<16x1xf32>
    %41 = vector.broadcast %1 : f32 to vector<16x1xf32>
    %42 = arith.mulf %41, %22 : vector<16x1xf32>
    %43 = tpu.reciprocal %42 : vector<16x1xf32> -> vector<16x1xf32>
    %44 = arith.mulf %40, %43 : vector<16x1xf32>
    %cst_15 = arith.constant 0.000000e+00 : f32
    %45 = vector.broadcast %cst_15 : f32 to vector<16x1xf32>
    %46 = arith.cmpf oeq, %13, %45 : vector<16x1xf32>
    %cst_16 = arith.constant 0.000000e+00 : f32
    %47 = vector.broadcast %cst_16 : f32 to vector<16x1xf32>
    %48 = arith.select %46, %47, %44 : vector<16x1xi1>, vector<16x1xf32>
    %49 = arith.mulf %48, %20 : vector<16x1xf32>
    %cst_17 = arith.constant 1.000000e-15 : f32
    %50 = vector.broadcast %cst_17 : f32 to vector<16x1xf32>
    %51 = arith.maximumf %49, %50 : vector<16x1xf32>
    %52 = vector.broadcast %2 : f32 to vector<16x1xf32>
    %53 = arith.cmpf ogt, %51, %52 : vector<16x1xf32>
    %54 = tpu.reciprocal %51 : vector<16x1xf32> -> vector<16x1xf32>
    %55 = vector.broadcast %2 : f32 to vector<16x1xf32>
    %56 = arith.mulf %55, %54 : vector<16x1xf32>
    %cst_18 = arith.constant 1.000000e+00 : f32
    %57 = vector.broadcast %cst_18 : f32 to vector<16x1xf32>
    %58 = arith.select %53, %56, %57 : vector<16x1xi1>, vector<16x1xf32>
    %59 = arith.mulf %58, %48 : vector<16x1xf32>
    %60 = arith.mulf %59, %20 : vector<16x1xf32>
    %cst_19 = arith.constant 1.000000e-15 : f32
    %61 = vector.broadcast %cst_19 : f32 to vector<16x1xf32>
    %62 = arith.maximumf %60, %61 : vector<16x1xf32>
    %63 = vector.broadcast %1 : f32 to vector<16x1xf32>
    %64 = arith.mulf %63, %62 : vector<16x1xf32>
    %cst_20 = arith.constant -1.000000e+00 : f32
    %cst_21 = arith.constant 1.000000e+00 : f32
    %65 = vector.broadcast %cst_20 : f32 to vector<16x1xf32>
    %66 = arith.maximumf %65, %64 : vector<16x1xf32>
    %67 = vector.broadcast %cst_21 : f32 to vector<16x1xf32>
    %68 = arith.minimumf %67, %66 : vector<16x1xf32>
    %69 = math.log1p %68 : vector<16x1xf32>
    %cst_22 = arith.constant 0.000000e+00 : f32
    %70 = vector.broadcast %cst_22 : f32 to vector<16x1xf32>
    %71 = arith.subf %70, %68 : vector<16x1xf32>
    %72 = math.log1p %71 : vector<16x1xf32>
    %73 = arith.subf %69, %72 : vector<16x1xf32>
    %cst_23 = arith.constant 5.000000e-01 : f32
    %74 = vector.broadcast %cst_23 : f32 to vector<16x1xf32>
    %75 = arith.mulf %74, %73 : vector<16x1xf32>
    %76 = vector.broadcast %1 : f32 to vector<16x1xf32>
    %77 = arith.mulf %76, %62 : vector<16x1xf32>
    %78 = tpu.reciprocal %77 : vector<16x1xf32> -> vector<16x1xf32>
    %79 = arith.mulf %75, %78 : vector<16x1xf32>
    %80 = arith.mulf %79, %59 : vector<16x1xf32>
    %81 = arith.mulf %80, %23 : vector<16x1xf32>
    %cst_24 = arith.constant 1.000000e-15 : f32
    %82 = vector.broadcast %cst_24 : f32 to vector<16x1xf32>
    %83 = arith.maximumf %81, %82 : vector<16x1xf32>
    %84 = vector.broadcast %1 : f32 to vector<16x1xf32>
    %85 = arith.mulf %84, %83 : vector<16x1xf32>
    %86 = math.tanh %85 : vector<16x1xf32>
    %87 = vector.broadcast %1 : f32 to vector<16x1xf32>
    %88 = arith.mulf %87, %83 : vector<16x1xf32>
    %89 = tpu.reciprocal %88 : vector<16x1xf32> -> vector<16x1xf32>
    %90 = arith.mulf %86, %89 : vector<16x1xf32>
    %91 = arith.mulf %90, %80 : vector<16x1xf32>
    %92 = arith.mulf %91, %23 : vector<16x1xf32>
    %cst_25 = arith.constant 1.000000e-15 : f32
    %93 = vector.broadcast %cst_25 : f32 to vector<16x1xf32>
    %94 = arith.maximumf %92, %93 : vector<16x1xf32>
    %95 = vector.broadcast %2 : f32 to vector<16x1xf32>
    %96 = arith.cmpf ogt, %94, %95 : vector<16x1xf32>
    %97 = tpu.reciprocal %94 : vector<16x1xf32> -> vector<16x1xf32>
    %98 = vector.broadcast %2 : f32 to vector<16x1xf32>
    %99 = arith.mulf %98, %97 : vector<16x1xf32>
    %cst_26 = arith.constant 1.000000e+00 : f32
    %100 = vector.broadcast %cst_26 : f32 to vector<16x1xf32>
    %101 = arith.select %96, %99, %100 : vector<16x1xi1>, vector<16x1xf32>
    %102 = arith.mulf %101, %91 : vector<16x1xf32>
    %103 = vector.broadcast %102 : vector<16x1xf32> to vector<16x128xf32>
    %104 = arith.mulf %103, %7 : vector<16x128xf32>
    %c0_27 = arith.constant 0 : index
    %c0_28 = arith.constant 0 : index
    %105 = vector.load %arg4[%c0_27, %c0_28] : memref<16x128xf32, #tpu.memory_space<vmem>>, vector<16x128xf32>
    tpu.vector_store %arg4[%c0_27, %c0_28], %104 {strides = array<i32>} : memref<16x128xf32, #tpu.memory_space<vmem>>, vector<16x128xf32>,
    return
  }
  func.func @transform_0(%arg0: i32) -> i32 {
    %c0_i32 = arith.constant 0 : i32
    %c0_i32_0 = arith.constant 0 : i32
    return %c0_i32 : i32
  }
  func.func @transform_1(%arg0: i32) -> (i32, i32) {
    %c0_i32 = arith.constant 0 : i32
    %c0_i32_0 = arith.constant 0 : i32
    return %arg0, %c0_i32 : i32, i32
  }
  func.func @transform_2(%arg0: i32) -> (i32, i32) {
    %c0_i32 = arith.constant 0 : i32
    %c0_i32_0 = arith.constant 0 : i32
    %c0_i32_1 = arith.constant 0 : i32
    return %c0_i32, %c0_i32_0 : i32, i32
  }
  func.func @transform_3(%arg0: i32) -> (i32, i32) {
    %c0_i32 = arith.constant 0 : i32
    %c0_i32_0 = arith.constant 0 : i32
    return %arg0, %c0_i32 : i32, i32
  }
}

</mosaic_0001>

<bundles_post_ra>
// kernel: hnn_forward.1
= control target key start
LH: loop header
LB: loop body
LE: loop exit
PB: predicated region body
PF: predicated region fallthrough
CT: control target
= control target key end

     0   :  { %s956_s0 = inlined_call_operand.<no memory space> [shape: f32[1], index: 0, kind: input, shape index: {}]   ;;  %s957_s1 = inlined_call_operand.vmem [shape: f32[16,128], index: 1, kind: input, shape index: {}]   ;;  %s958_s2 = inlined_call_operand.vmem [shape: f32[128,128], index: 2, kind: input, shape index: {}]   ;;  %s959_s3 = inlined_call_operand.hbm [shape: f32[16,128], index: 3, kind: output, shape index: {}]  }
   0x1   :  { %v65_v0 = vld [vmem:[%s958_s2 + $0x78] sm:$0xff]  ;;  %v64_v1 = vld [vmem:[%s958_s2 + $0x70] sm:$0xff] }
   0x2   :  { %66 = vmatpush.xpose.msra.mxu0 %v65_v0  ;;  %535 = vmatpush.xpose.msra.mxu1 %v65_v0 }
   0x3   :  { %9 = vsyncpa [#allocation4], 0  ;;  %v63_v2 = vld [vmem:[%s958_s2 + $0x68] sm:$0xff]  ;;  %v62_v3 = vld [vmem:[%s958_s2 + $0x60] sm:$0xff]  ;;  %v17_v20 = vstv %s956_s0  ;;  %s648_s23 = smov [#allocation3]   ;;  %s519_s27 = sshll.u32 %s959_s3, 4  ;;  %s520_s27 = int_to_ptr.hbm [resolvable:$true] %s519_s27 }
   0x4   :  { %v61_v4 = vld [vmem:[%s958_s2 + $0x58] sm:$0xff]  ;;  %v60_v5 = vld [vmem:[%s958_s2 + $0x50] sm:$0xff]  ;;  %v59_v6 = vld [vmem:[%s958_s2 + $0x48] sm:$0xff]  ;;  %558 = vrsqrt.f32 %v17_v20  ;;  %vm25_vm0 = vcmp.eq.f32.partialorder %v17_v20, inf  ;;  %v28_v28 = vand.u32 2147483648, %v17_v20  ;;  %vm27_vm1 = vcmp.eq.f32.partialorder %v17_v20, 0.0 }
   0x5   :  { %v58_v7 = vld [vmem:[%s958_s2 + $0x40] sm:$0xff]  ;;  %v57_v8 = vld [vmem:[%s958_s2 + $0x38] sm:$0xff]  ;;  %v56_v11 = vld [vmem:[%s958_s2 + $0x30] sm:$0xff]  ;;  %s517_s24 = sshll.u32 %s648_s23, 4  ;;  %s649_s28 = smov 128   ;;  %s518_s24 = int_to_ptr.vmem [resolvable:$true] %s517_s24 }
   0x6   :  { %67 = vmatpush.xpose.msra.mxu0 %v64_v1  ;;  %536 = vmatpush.xpose.msra.mxu1 %v64_v1  ;;  %v48_v9 = vld [vmem:[%s957_s1] sm:$0xff]  ;;  %v49_v12 = vld [vmem:[%s957_s1 + $0x8] sm:$0xff]  ;;  %v53_v16 = vld [vmem:[%s958_s2 + $0x18] sm:$0xff]  ;;  %s650_s29 = smov 8  }
   0x7   :  { %v91_v10 = vmul.f32 %v48_v9, %v48_v9  ;;  %v55_v13 = vld [vmem:[%s958_s2 + $0x28] sm:$0xff]  ;;  %v92_v14 = vmul.f32 %v49_v12, %v49_v12  ;;  %v54_v15 = vld [vmem:[%s958_s2 + $0x20] sm:$0xff]  ;;  %v52_v17 = vld [vmem:[%s958_s2 + $0x10] sm:$0xff] }
   0x8   :  { %v51_v18 = vld [vmem:[%s958_s2 + $0x8] sm:$0xff]  ;;  %v50_v19 = vld [vmem:[%s958_s2] sm:$0xff] }
   0x9   :  { %93 = vadd.xlane.f32.xlu0 %v91_v10 }
   0xa   :  { %68 = vmatpush.xpose.msra.mxu0 %v63_v2  ;;  %537 = vmatpush.xpose.msra.mxu1 %v63_v2  ;;  %v559_v21 = vpop.eup %558 }
   0xb   :  { %v19_v22 = vmul.f32 %v559_v21, %v17_v20 }
   0xd   :  { %v20_v23 = vmul.f32 %v559_v21, %v19_v22 }
   0xe   :  { %69 = vmatpush.xpose.msra.mxu0 %v62_v3  ;;  %538 = vmatpush.xpose.msra.mxu1 %v62_v3 }
   0xf   :  { %v21_v24 = vmul.f32 0.5, %v20_v23 }
  0x11   :  { %95 = vadd.xlane.f32.xlu0 %v92_v14  ;;  %v22_v25 = vsub.f32 1.5, %v21_v24 }
  0x12   :  { %70 = vmatpush.xpose.msra.mxu0 %v61_v4  ;;  %539 = vmatpush.xpose.msra.mxu1 %v61_v4 }
  0x13   :  { %v23_v26 = vmul.f32 %v559_v21, %v22_v25 }
  0x15   :  { %v24_v27 = vmul.f32 %v23_v26, %v17_v20 }
  0x16   :  { %71 = vmatpush.xpose.msra.mxu0 %v60_v5  ;;  %540 = vmatpush.xpose.msra.mxu1 %v60_v5 }
  0x17   :  { %v26_v33 = vsel %vm25_vm0, %v17_v20, %v24_v27 }
  0x18   :  { %v29_v35 = vsel %vm27_vm1, %v28_v28, %v26_v33 }
  0x19   :  { %551 = vpush %v29_v35 }
  0x1a   :  { %72 = vmatpush.xpose.msra.mxu0 %v59_v6  ;;  %541 = vmatpush.xpose.msra.mxu1 %v59_v6 }
  0x1e   :  { %73 = vmatpush.xpose.msra.mxu0 %v58_v7  ;;  %542 = vmatpush.xpose.msra.mxu1 %v58_v7 }
  0x22   :  { %74 = vmatpush.xpose.msra.mxu0 %v57_v8  ;;  %543 = vmatpush.xpose.msra.mxu1 %v57_v8 }
  0x26   :  { %75 = vmatpush.xpose.msra.mxu0 %v56_v11  ;;  %544 = vmatpush.xpose.msra.mxu1 %v56_v11 }
  0x2a   :  { %76 = vmatpush.xpose.msra.mxu0 %v55_v13  ;;  %545 = vmatpush.xpose.msra.mxu1 %v55_v13 }
  0x2e   :  { %77 = vmatpush.xpose.msra.mxu0 %v54_v15  ;;  %546 = vmatpush.xpose.msra.mxu1 %v54_v15 }
  0x32   :  { %78 = vmatpush.xpose.msra.mxu0 %v53_v16  ;;  %547 = vmatpush.xpose.msra.mxu1 %v53_v16 }
  0x36   :  { %79 = vmatpush.xpose.msra.mxu0 %v52_v17  ;;  %548 = vmatpush.xpose.msra.mxu1 %v52_v17 }
  0x3a   :  { %80 = vmatpush.xpose.msra.mxu0 %v51_v18  ;;  %549 = vmatpush.xpose.msra.mxu1 %v51_v18 }
  0x3e   :  { %81 = vmatpush.xpose.msra.mxu0 %v50_v19  ;;  %550 = vmatpush.xpose.msra.mxu1 %v50_v19 }
  0x41   :  { %82 = vmatmul.f32.vlgmr.msra.gmra.mxu0 %v48_v9  ;;  %85 = vmatmul.f32.vlgmr.msra.gmra.mxu1 %v49_v12 }
  0x4a   :  { %s552_s0 = spop %551 }
  0x4b   :  { %v736_v39 = vstv %s552_s0 }
  0x4c   :  { %560 = vrcp.f32 %v736_v39  ;;  %v43_v42 = vand.u32 2147483648, %v736_v39  ;;  %vm37_vm2 = vweird.f32 %v736_v39  ;;  %v41_v44 = vand.u32 2147483647, %v736_v39 }
  0x4e   :  { %v44_v47 = vor.u32 1.1754944e-38, %v43_v42  ;;  %vm42_vm5 = vcmp.eq.f32.partialorder %v41_v44, 8.507059e+37 }
  0x52   :  { %v561_v40 = vpop.eup %560 }
  0x53   :  { %v33_v41 = vmul.f32 %v561_v40, %v736_v39  ;;  %vm38_vm3 = vweird.f32 %v561_v40 }
  0x54   :  { %vm39_vm4 = vmor %vm37_vm2, %vm38_vm3 }
  0x55   :  { %v34_v43 = vsub.f32 1.0, %v33_v41 }
  0x57   :  { %v35_v46 = vmul.f32 %v561_v40, %v34_v43 }
  0x59   :  { %v36_v48 = vadd.f32 %v561_v40, %v35_v46 }
  0x5b   :  { %v40_v49 = vsel %vm39_vm4, %v561_v40, %v36_v48 }
  0x5c   :  { %v45_v50 = vsel %vm42_vm5, %v44_v47, %v40_v49 }
  0x5d   :  { %553 = vpush %v45_v50 }
  0x7c   :  { %v94_v45 = vpop.xlane.xlu0 %93 }
  0x7d   :  { %562 = vrsqrt.f32 %v94_v45  ;;  %vm116_vm6 = vcmp.eq.f32.partialorder %v94_v45, inf  ;;  %v119_v0 = vand.u32 2147483648, %v94_v45  ;;  %vm118_vm7 = vcmp.eq.f32.partialorder %v94_v45, 0.0 }
  0x83   :  { %v563_v51 = vpop.eup %562 }
  0x84   :  { %v96_v52 = vpop.xlane.xlu0 %95  ;;  %v110_v53 = vmul.f32 %v563_v51, %v94_v45 }
  0x85   :  { %564 = vrsqrt.f32 %v96_v52  ;;  %vm128_vm8 = vcmp.eq.f32.partialorder %v96_v52, inf  ;;  %v131_v7 = vand.u32 2147483648, %v96_v52  ;;  %vm130_vm9 = vcmp.eq.f32.partialorder %v96_v52, 0.0 }
  0x86   :  { %v111_v54 = vmul.f32 %v563_v51, %v110_v53 }
  0x88   :  { %v112_v56 = vmul.f32 0.5, %v111_v54 }
  0x8a   :  { %v113_v58 = vsub.f32 1.5, %v112_v56 }
  0x8b   :  { %v565_v55 = vpop.eup %564 }
  0x8c   :  { %v122_v57 = vmul.f32 %v565_v55, %v96_v52  ;;  %v114_v60 = vmul.f32 %v563_v51, %v113_v58 }
  0x8e   :  { %v123_v59 = vmul.f32 %v565_v55, %v122_v57  ;;  %v115_v62 = vmul.f32 %v114_v60, %v94_v45  ;;  %s554_s2 = spop %553 }
  0x8f   :  { %s47_s22 = smul.f32 0.996, %s554_s2 }
  0x90   :  { %v124_v61 = vmul.f32 0.5, %v123_v59  ;;  %v117_v1 = vsel %vm116_vm6, %v94_v45, %v115_v62 }
  0x91   :  { %v120_v3 = vsel %vm118_vm7, %v119_v0, %v117_v1 }
  0x92   :  { %v125_v63 = vsub.f32 1.5, %v124_v61  ;;  %v743_v4 = vmax.f32 %v120_v3, 1e-15 }
  0x94   :  { %v126_v2 = vmul.f32 %v565_v55, %v125_v63  ;;  %v216_v6 = vmul.f32 %v743_v4, %v736_v39  ;;  %566 = vrcp.f32 %v743_v4  ;;  %vm190_vm10 = vweird.f32 %v743_v4 }
  0x95   :  { %v196_v48 = vand.u32 2147483648, %v743_v4 }
  0x96   :  { %v127_v5 = vmul.f32 %v126_v2, %v96_v52  ;;  %v531_v9 = vclamps-f32 %v216_v6, 1.0 }
  0x97   :  { %v197_v0 = vor.u32 1.1754944e-38, %v196_v48 }
  0x98   :  { %v129_v8 = vsel %vm128_vm8, %v96_v52, %v127_v5  ;;  %v240_v14 = vsub.f32 0.0, %v531_v9  ;;  %v222_v15 = vadd.f32 1.0, %v531_v9  ;;  %v225_v23 = vmul.f32 -0.5, %v531_v9 }
  0x99   :  { %v132_v10 = vsel %vm130_vm9, %v131_v7, %v129_v8 }
  0x9a   :  { %v748_v11 = vpop.eup %566  ;;  %v750_v12 = vmax.f32 %v132_v10, 1e-15  ;;  %v242_v18 = vadd.f32 1.0, %v240_v14  ;;  %v245_v24 = vmul.f32 -0.5, %v240_v14 }
  0x9b   :  { %v186_v17 = vmul.f32 %v748_v11, %v743_v4  ;;  %vm191_vm11 = vweird.f32 %v748_v11 }
  0x9c   :  { %v217_v16 = vmul.f32 %v750_v12, %v736_v39  ;;  %v246_v35 = vadd.f32 1.0, %v245_v24  ;;  %vm798_vm15 = vmor %vm190_vm10, %vm191_vm11  ;;  %vm204_vm2 = vweird.f32 %v750_v12 }
  0x9d   :  { %v187_v21 = vsub.f32 1.0, %v186_v17 }
  0x9e   :  { %v760_v19 = vclamps-f32 %v217_v16, 1.0  ;;  %v247_v52 = vmul.f32 %v246_v35, %v240_v14 }
  0xa0   :  { %v767_v27 = vsub.f32 0.0, %v760_v19  ;;  %v231_v40 = vadd.f32 1.0, %v760_v19  ;;  %v234_v62 = vmul.f32 -0.5, %v760_v19 }
  0xa2   :  { %v251_v44 = vadd.f32 1.0, %v767_v27  ;;  %v254_v63 = vmul.f32 -0.5, %v767_v27 }
  0xbe   :  { %v83_v29 = vpop.f32.mrf.mxu0  ;;  %v86_v32 = vpop.f32.mrf.mxu1 }
  0xbf   :  { %v728_v30 = vmax.f32 %v83_v29, 0.0  ;;  %v97_v31 = vmul.f32 %v83_v29, %v83_v29  ;;  %v732_v36 = vmax.f32 %v86_v32, 0.0  ;;  %v98_v37 = vmul.f32 %v86_v32, %v86_v32 }
  0xc0   :  { %v188_v29 = vmul.f32 %v748_v11, %v187_v21  ;;  %v210_v21 = vand.u32 2147483648, %v750_v12 }
  0xc1   :  { %99 = vadd.xlane.f32.xlu1 %v97_v31  ;;  %v103_v34 = vmul.f32 %v728_v30, %v728_v30  ;;  %v104_v38 = vmul.f32 %v732_v36, %v732_v36  ;;  %v194_v31 = vand.u32 2147483647, %v743_v4 }
  0xc2   :  { %v189_v46 = vadd.f32 %v748_v11, %v188_v29 }
  0xc3   :  { %105 = vadd.xlane.f32.xlu2 %v103_v34  ;;  %v226_v34 = vadd.f32 1.0, %v225_v23  ;;  %vm780_vm12 = vcmp.eq.f32.partialorder %v194_v31, 8.507059e+37  ;;  %v257_v23 = vand.u32 2147483647, %v767_v27 }
  0xc4   :  { %v193_v3 = vsel %vm798_vm15, %v748_v11, %v189_v46 }
  0xc5   :  { %v227_v51 = vmul.f32 %v531_v9, %v226_v34  ;;  %v198_v11 = vsel %vm780_vm12, %v197_v0, %v193_v3  ;;  %vm258_vm7 = vcmp.lt.f32.partialorder %v257_v23, 0.0004427343 }
  0xc9   :  { %101 = vadd.xlane.f32.xlu1 %v98_v37  ;;  %v228_v37 = vand.u32 2147483647, %v531_v9 }
  0xcb   :  { %107 = vadd.xlane.f32.xlu2 %v104_v38  ;;  %v248_v38 = vand.u32 2147483647, %v240_v14  ;;  %vm786_vm13 = vcmp.lt.f32.partialorder %v228_v37, 0.0004427343  ;;  %v235_v14 = vadd.f32 1.0, %v234_v62 }
  0xcd   :  { %vm790_vm14 = vcmp.lt.f32.partialorder %v248_v38, 0.0004427343 }
 0x134   :  { %v752_v13 = vpop.xlane.xlu1 %99 }
 0x135   :  { %568 = vrsqrt.f32 %v752_v13  ;;  %vm142_vm0 = vcmp.eq.f32.partialorder %v752_v13, inf  ;;  %v145_v61 = vand.u32 2147483648, %v752_v13  ;;  %vm144_vm1 = vcmp.eq.f32.partialorder %v752_v13, 0.0 }
 0x136   :  { %570 = vrcp.f32 %v750_v12 }
 0x137   :  { %572 = vlog2.f32 %v222_v15  ;;  %v255_v15 = vadd.f32 1.0, %v254_v63 }
 0x138   :  { %574 = vlog2.f32 %v242_v18 }
 0x13b   :  { %v569_v20 = vpop.eup %568 }
 0x13c   :  { %v136_v22 = vmul.f32 %v569_v20, %v752_v13  ;;  %v763_v25 = vpop.xlane.xlu1 %101  ;;  %v769_v28 = vpop.eup %570 }
 0x13d   :  { %576 = vrsqrt.f32 %v763_v25  ;;  %v573_v32 = vpop.eup %572  ;;  %v200_v43 = vmul.f32 %v769_v28, %v750_v12  ;;  %vm205_vm3 = vweird.f32 %v769_v28  ;;  %vm154_vm4 = vcmp.eq.f32.partialorder %v763_v25, inf }
 0x13e   :  { %v137_v26 = vmul.f32 %v569_v20, %v136_v22  ;;  %v575_v41 = vpop.eup %574  ;;  %v224_v49 = vmul.f32 0.6931472, %v573_v32  ;;  %578 = vlog2.f32 %v231_v40  ;;  %v237_v22 = vand.u32 2147483647, %v760_v19  ;;  %vm847_vm8 = vmor %vm204_vm2, %vm205_vm3 }
 0x13f   :  { %v244_v55 = vmul.f32 0.6931472, %v575_v41  ;;  %v201_v59 = vsub.f32 1.0, %v200_v43  ;;  %580 = vlog2.f32 %v251_v44  ;;  %v236_v32 = vmul.f32 %v760_v19, %v235_v14 }
 0x140   :  { %v138_v33 = vmul.f32 0.5, %v137_v26  ;;  %v230_v5 = vsel %vm786_vm13, %v227_v51, %v224_v49  ;;  %v208_v26 = vand.u32 2147483647, %v750_v12  ;;  %v157_v35 = vand.u32 2147483648, %v763_v25 }
 0x141   :  { %v250_v6 = vsel %vm790_vm14, %v247_v52, %v244_v55  ;;  %v202_v8 = vmul.f32 %v769_v28, %v201_v59  ;;  %vm156_vm5 = vcmp.eq.f32.partialorder %v763_v25, 0.0  ;;  %vm839_vm6 = vcmp.lt.f32.partialorder %v237_v22, 0.0004427343 }
 0x142   :  { %v139_v42 = vsub.f32 1.5, %v138_v33  ;;  %v260_v17 = vsub.f32 %v230_v5, %v250_v6  ;;  %v256_v33 = vmul.f32 %v255_v15, %v767_v27  ;;  %vm209_vm9 = vcmp.eq.f32.partialorder %v208_v26, 8.507059e+37 }
 0x143   :  { %v577_v45 = vpop.eup %576  ;;  %v203_v24 = vadd.f32 %v769_v28, %v202_v8 }
 0x144   :  { %v140_v50 = vmul.f32 %v569_v20, %v139_v42  ;;  %v148_v53 = vmul.f32 %v577_v45, %v763_v25  ;;  %v579_v10 = vpop.eup %578  ;;  %v262_v41 = vmul.f32 0.5, %v260_v17 }
 0x145   :  { %v581_v16 = vpop.eup %580  ;;  %v233_v31 = vmul.f32 0.6931472, %v579_v10  ;;  %v207_v12 = vsel %vm847_vm8, %v769_v28, %v203_v24 }
 0x146   :  { %v141_v58 = vmul.f32 %v140_v50, %v752_v13  ;;  %v149_v60 = vmul.f32 %v577_v45, %v148_v53  ;;  %v253_v37 = vmul.f32 0.6931472, %v581_v16 }
 0x147   :  { %v239_v46 = vsel %vm839_vm6, %v236_v32, %v233_v31 }
 0x148   :  { %v143_v1 = vsel %vm142_vm0, %v752_v13, %v141_v58  ;;  %v150_v2 = vmul.f32 0.5, %v149_v60  ;;  %v259_v47 = vsel %vm258_vm7, %v256_v33, %v253_v37 }
 0x149   :  { %v814_v4 = vsel %vm144_vm1, %v145_v61, %v143_v1  ;;  %v261_v51 = vsub.f32 %v239_v46, %v259_v47 }
 0x14a   :  { %v159_v7 = vmax.f32 %v814_v4, 1e-15  ;;  %v151_v9 = vsub.f32 1.5, %v150_v2 }
 0x14b   :  { %v263_v58 = vmul.f32 0.5, %v261_v51 }
 0x14c   :  { %v268_v18 = vmul.f32 %v159_v7, %v736_v39  ;;  %v152_v20 = vmul.f32 %v577_v45, %v151_v9  ;;  %v213_v34 = vmul.f32 %v198_v11, %v159_v7  ;;  %v211_v45 = vor.u32 1.1754944e-38, %v210_v21 }
 0x14e   :  { %582 = vrcp.f32 %v268_v18  ;;  %v153_v29 = vmul.f32 %v152_v20, %v763_v25  ;;  %v264_v44 = vmul.f32 %v262_v41, %v213_v34  ;;  %v281_v52 = vand.u32 2147483648, %v268_v18 }
 0x14f   :  { %v212_v53 = vsel %vm209_vm9, %v211_v45, %v207_v12  ;;  %v279_v55 = vand.u32 2147483647, %v268_v18  ;;  %vm275_vm11 = vweird.f32 %v268_v18 }
 0x150   :  { %v155_v38 = vsel %vm154_vm4, %v763_v25, %v153_v29  ;;  %v282_v59 = vor.u32 1.1754944e-38, %v281_v52 }
 0x151   :  { %v853_v27 = vsel %vm156_vm5, %v157_v35, %v155_v38  ;;  %vm280_vm13 = vcmp.eq.f32.partialorder %v279_v55, 8.507059e+37  ;;  %v871_v35 = vstv %s47_s22 }
 0x152   :  { %v160_v42 = vmax.f32 %v853_v27, 1e-15 }
 0x154   :  { %v583_v43 = vpop.eup %582  ;;  %v269_v49 = vmul.f32 %v160_v42, %v736_v39  ;;  %v214_v56 = vmul.f32 %v212_v53, %v160_v42 }
 0x155   :  { %v271_v48 = vmul.f32 %v583_v43, %v268_v18  ;;  %vm276_vm10 = vweird.f32 %v583_v43  ;;  %v867_v18 = vpop.xlane.xlu2 %105 }
 0x156   :  { %584 = vrcp.f32 %v269_v49  ;;  %vm277_vm12 = vmor %vm275_vm11, %vm276_vm10  ;;  %v265_v61 = vmul.f32 %v263_v58, %v214_v56  ;;  %v295_v5 = vand.u32 2147483648, %v269_v49  ;;  %v293_v8 = vand.u32 2147483647, %v269_v49 }
 0x157   :  { %v272_v50 = vsub.f32 1.0, %v271_v48  ;;  %586 = vtanh.f32 %v264_v44  ;;  %vm289_vm15 = vweird.f32 %v269_v49 }
 0x158   :  { %588 = vtanh.f32 %v265_v61  ;;  %v296_v14 = vor.u32 1.1754944e-38, %v295_v5  ;;  %vm294_vm2 = vcmp.eq.f32.partialorder %v293_v8, 8.507059e+37 }
 0x159   :  { %v273_v54 = vmul.f32 %v583_v43, %v272_v50 }
 0x15b   :  { %v274_v57 = vadd.f32 %v583_v43, %v273_v54 }
 0x15c   :  { %v585_v60 = vpop.eup %584 }
 0x15d   :  { %v278_v28 = vsel %vm277_vm12, %v583_v43, %v274_v57  ;;  %v587_v62 = vpop.eup %586  ;;  %v285_v0 = vmul.f32 %v585_v60, %v269_v49  ;;  %vm290_vm14 = vweird.f32 %v585_v60  ;;  %v875_v42 = vpop.xlane.xlu2 %107 }
 0x15e   :  { %v283_v63 = vsel %vm280_vm13, %v282_v59, %v278_v28  ;;  %vm291_vm0 = vmor %vm289_vm15, %vm290_vm14  ;;  %v589_v16 = vpop.eup %588 }
 0x15f   :  { %v298_v1 = vmul.f32 %v587_v62, %v283_v63  ;;  %v286_v2 = vsub.f32 1.0, %v285_v0 }
 0x161   :  { %v302_v3 = vsel %vm144_vm1, 0.0, %v298_v1  ;;  %v287_v7 = vmul.f32 %v585_v60, %v286_v2 }
 0x162   :  { %v304_v6 = vmul.f32 %v302_v3, %v814_v4 }
 0x163   :  { %v288_v10 = vadd.f32 %v585_v60, %v287_v7 }
 0x164   :  { %v306_v9 = vmax.f32 %v304_v6, 1e-15 }
 0x165   :  { %v292_v15 = vsel %vm291_vm0, %v585_v60, %v288_v10  ;;  %vm168_vm0 = vcmp.eq.f32.partialorder %v867_v18, inf }
 0x166   :  { %590 = vrcp.f32 %v306_v9  ;;  %v297_v11 = vsel %vm294_vm2, %v296_v14, %v292_v15  ;;  %v322_v26 = vand.u32 2147483648, %v306_v9  ;;  %v320_v31 = vand.u32 2147483647, %v306_v9 }
 0x167   :  { %v299_v17 = vmul.f32 %v589_v16, %v297_v11  ;;  %592 = vrsqrt.f32 %v867_v18  ;;  %vm316_vm3 = vweird.f32 %v306_v9  ;;  %vm309_vm6 = vcmp.gt.f32.partialorder %v306_v9, %v871_v35 }
 0x168   :  { %v323_v33 = vor.u32 1.1754944e-38, %v322_v26 }
 0x169   :  { %v303_v13 = vsel %vm156_vm5, 0.0, %v299_v17  ;;  %vm321_vm5 = vcmp.eq.f32.partialorder %v320_v31, 8.507059e+37 }
 0x16a   :  { %v305_v20 = vmul.f32 %v303_v13, %v853_v27 }
 0x16c   :  { %v591_v21 = vpop.eup %590  ;;  %v307_v22 = vmax.f32 %v305_v20, 1e-15 }
 0x16d   :  { %v312_v23 = vmul.f32 %v591_v21, %v306_v9  ;;  %vm317_vm1 = vweird.f32 %v591_v21  ;;  %v593_v25 = vpop.eup %592 }
 0x16e   :  { %594 = vrcp.f32 %v307_v22  ;;  %vm318_vm4 = vmor %vm316_vm3, %vm317_vm1  ;;  %v162_v19 = vmul.f32 %v593_v25, %v867_v18  ;;  %v336_v44 = vand.u32 2147483648, %v307_v22  ;;  %v334_v47 = vand.u32 2147483647, %v307_v22 }
 0x16f   :  { %v313_v24 = vsub.f32 1.0, %v312_v23  ;;  %596 = vrsqrt.f32 %v875_v42  ;;  %vm330_vm8 = vweird.f32 %v307_v22  ;;  %vm310_vm11 = vcmp.gt.f32.partialorder %v307_v22, %v871_v35 }
 0x170   :  { %v163_v12 = vmul.f32 %v593_v25, %v162_v19  ;;  %v337_v51 = vor.u32 1.1754944e-38, %v336_v44  ;;  %vm335_vm10 = vcmp.eq.f32.partialorder %v334_v47, 8.507059e+37  ;;  %vm170_vm3 = vcmp.eq.f32.partialorder %v867_v18, 0.0 }
 0x171   :  { %v314_v29 = vmul.f32 %v591_v21, %v313_v24 }
 0x172   :  { %v164_v55 = vmul.f32 0.5, %v163_v12 }
 0x173   :  { %v315_v32 = vadd.f32 %v591_v21, %v314_v29 }
 0x174   :  { %v595_v34 = vpop.eup %594  ;;  %v165_v28 = vsub.f32 1.5, %v164_v55 }
 0x175   :  { %v319_v37 = vsel %vm318_vm4, %v591_v21, %v315_v32  ;;  %v326_v40 = vmul.f32 %v595_v34, %v307_v22  ;;  %vm331_vm7 = vweird.f32 %v595_v34  ;;  %v887_v58 = vpop.eup %596 }
 0x176   :  { %v324_v38 = vsel %vm321_vm5, %v323_v33, %v319_v37  ;;  %vm332_vm9 = vmor %vm330_vm8, %vm331_vm7  ;;  %v174_v61 = vmul.f32 %v887_v58, %v875_v42  ;;  %v166_v6 = vmul.f32 %v593_v25, %v165_v28 }
 0x177   :  { %v339_v41 = vmul.f32 %v324_v38, %v871_v35  ;;  %v327_v43 = vsub.f32 1.0, %v326_v40 }
 0x178   :  { %v175_v7 = vmul.f32 %v887_v58, %v174_v61  ;;  %v167_v11 = vmul.f32 %v166_v6, %v867_v18 }
 0x179   :  { %v341_v45 = vsel %vm309_vm6, %v339_v41, 1.0  ;;  %v328_v46 = vmul.f32 %v595_v34, %v327_v43 }
 0x17a   :  { %v878_v48 = vmul.f32 %v341_v45, %v302_v3  ;;  %v176_v17 = vmul.f32 0.5, %v175_v7 }
 0x17b   :  { %v329_v49 = vadd.f32 %v595_v34, %v328_v46  ;;  %v171_v46 = vand.u32 2147483648, %v867_v18 }
 0x17c   :  { %v345_v50 = vmul.f32 %v878_v48, %v814_v4 }
 0x17d   :  { %v333_v52 = vsel %vm332_vm9, %v595_v34, %v329_v49 }
 0x17e   :  { %v347_v53 = vmax.f32 %v345_v50, 1e-15  ;;  %v338_v54 = vsel %vm335_vm10, %v337_v51, %v333_v52  ;;  %v169_v50 = vsel %vm168_vm0, %v867_v18, %v167_v11  ;;  %v177_v51 = vsub.f32 1.5, %v176_v17 }
 0x17f   :  { %v340_v56 = vmul.f32 %v338_v54, %v871_v35  ;;  %v929_v61 = vsel %vm170_vm3, %v171_v46, %v169_v50  ;;  %vm180_vm10 = vcmp.eq.f32.partialorder %v875_v42, inf }
 0x180   :  { %v885_v57 = vmul.f32 %v347_v53, %v736_v39 }
 0x181   :  { %v342_v59 = vsel %vm310_vm11, %v340_v56, 1.0  ;;  %vm182_vm11 = vcmp.eq.f32.partialorder %v875_v42, 0.0 }
 0x182   :  { %v533_v60 = vclamps-f32 %v885_v57, 1.0  ;;  %598 = vrcp.f32 %v885_v57  ;;  %v892_v4 = vmul.f32 %v342_v59, %v303_v13  ;;  %vm402_vm12 = vweird.f32 %v885_v57 }
 0x183   :  { %v406_v31 = vand.u32 2147483647, %v885_v57  ;;  %v408_v25 = vand.u32 2147483648, %v885_v57 }
 0x184   :  { %v355_v62 = vadd.f32 1.0, %v533_v60  ;;  %v373_v63 = vsub.f32 0.0, %v533_v60  ;;  %v346_v0 = vmul.f32 %v892_v4, %v853_v27  ;;  %v358_v3 = vmul.f32 -0.5, %v533_v60 }
 0x185   :  { %v361_v20 = vand.u32 2147483647, %v533_v60  ;;  %v409_v53 = vor.u32 1.1754944e-38, %v408_v25  ;;  %vm407_vm1 = vcmp.eq.f32.partialorder %v406_v31, 8.507059e+37 }
 0x186   :  { %600 = vlog2.f32 %v355_v62  ;;  %v375_v1 = vadd.f32 1.0, %v373_v63  ;;  %v348_v2 = vmax.f32 %v346_v0, 1e-15  ;;  %v378_v8 = vmul.f32 -0.5, %v373_v63 }
 0x187   :  { %v359_v15 = vadd.f32 1.0, %v358_v3  ;;  %v381_v22 = vand.u32 2147483647, %v373_v63  ;;  %vm362_vm14 = vcmp.lt.f32.partialorder %v361_v20, 0.0004427343 }
 0x188   :  { %v599_v5 = vpop.eup %598  ;;  %602 = vlog2.f32 %v375_v1  ;;  %v900_v9 = vmul.f32 %v348_v2, %v736_v39  ;;  %v379_v13 = vadd.f32 1.0, %v378_v8  ;;  %v178_v2 = vmul.f32 %v887_v58, %v177_v51 }
 0x189   :  { %v398_v10 = vmul.f32 %v599_v5, %v885_v57  ;;  %v360_v32 = vmul.f32 %v533_v60, %v359_v15  ;;  %vm403_vm13 = vweird.f32 %v599_v5  ;;  %vm382_vm15 = vcmp.lt.f32.partialorder %v381_v22, 0.0004427343 }
 0x18a   :  { %v904_v14 = vclamps-f32 %v900_v9, 1.0  ;;  %604 = vrcp.f32 %v900_v9  ;;  %v380_v37 = vmul.f32 %v379_v13, %v373_v63  ;;  %vm918_vm2 = vmor %vm402_vm12, %vm403_vm13  ;;  %vm416_vm7 = vweird.f32 %v900_v9 }
 0x18b   :  { %v399_v27 = vsub.f32 1.0, %v398_v10  ;;  %v420_v10 = vand.u32 2147483647, %v900_v9 }
 0x18c   :  { %v601_v16 = vpop.eup %600  ;;  %v364_v21 = vadd.f32 1.0, %v904_v14  ;;  %v374_v26 = vsub.f32 0.0, %v904_v14  ;;  %v367_v33 = vmul.f32 -0.5, %v904_v14  ;;  %v370_v59 = vand.u32 2147483647, %v904_v14 }
 0x18d   :  { %v357_v24 = vmul.f32 0.6931472, %v601_v16  ;;  %v400_v29 = vmul.f32 %v599_v5, %v399_v27  ;;  %vm421_vm9 = vcmp.eq.f32.partialorder %v420_v10, 8.507059e+37 }
 0x18e   :  { %v603_v23 = vpop.eup %602  ;;  %606 = vlog2.f32 %v364_v21  ;;  %v384_v38 = vadd.f32 1.0, %v374_v26  ;;  %v387_v41 = vmul.f32 -0.5, %v374_v26  ;;  %v368_v52 = vadd.f32 1.0, %v367_v33 }
 0x18f   :  { %v377_v34 = vmul.f32 0.6931472, %v603_v23  ;;  %v401_v19 = vadd.f32 %v599_v5, %v400_v29  ;;  %v363_v43 = vsel %vm362_vm14, %v360_v32, %v357_v24  ;;  %v390_v60 = vand.u32 2147483647, %v374_v26 }
 0x190   :  { %v605_v40 = vpop.eup %604  ;;  %608 = vlog2.f32 %v384_v38  ;;  %v388_v55 = vadd.f32 1.0, %v387_v41  ;;  %v369_v3 = vmul.f32 %v904_v14, %v368_v52  ;;  %vm371_vm5 = vcmp.lt.f32.partialorder %v370_v59, 0.0004427343 }
 0x191   :  { %v383_v44 = vsel %vm382_vm15, %v380_v37, %v377_v34  ;;  %v405_v12 = vsel %vm918_vm2, %v599_v5, %v401_v19  ;;  %v412_v49 = vmul.f32 %v605_v40, %v900_v9  ;;  %vm417_vm4 = vweird.f32 %v605_v40 }
 0x192   :  { %v393_v47 = vsub.f32 %v363_v43, %v383_v44  ;;  %v410_v28 = vsel %vm407_vm1, %v409_v53, %v405_v12  ;;  %v422_v5 = vand.u32 2147483648, %v900_v9  ;;  %v389_v7 = vmul.f32 %v388_v55, %v374_v26  ;;  %vm418_vm8 = vmor %vm416_vm7, %vm417_vm4 }
 0x193   :  { %v413_v57 = vsub.f32 1.0, %v412_v49  ;;  %vm391_vm6 = vcmp.lt.f32.partialorder %v390_v60, 0.0004427343  ;;  %v179_v14 = vmul.f32 %v178_v2, %v875_v42  ;;  %v183_v23 = vand.u32 2147483648, %v875_v42 }
 0x194   :  { %v607_v54 = vpop.eup %606  ;;  %v395_v56 = vmul.f32 0.5, %v393_v47  ;;  %v423_v17 = vor.u32 1.1754944e-38, %v422_v5 }
 0x195   :  { %v366_v62 = vmul.f32 0.6931472, %v607_v54  ;;  %v414_v63 = vmul.f32 %v605_v40, %v413_v57  ;;  %v181_v9 = vsel %vm180_vm10, %v875_v42, %v179_v14 }
 0x196   :  { %v425_v0 = vmul.f32 %v410_v28, %v395_v56  ;;  %v609_v1 = vpop.eup %608  ;;  %v184_v26 = vsel %vm182_vm11, %v183_v23, %v181_v9 }
 0x197   :  { %v386_v6 = vmul.f32 0.6931472, %v609_v1  ;;  %v415_v18 = vadd.f32 %v605_v40, %v414_v63  ;;  %v372_v15 = vsel %vm371_vm5, %v369_v3, %v366_v62 }
 0x198   :  { %v427_v8 = vmul.f32 %v425_v0, %v878_v48 }
 0x199   :  { %v392_v27 = vsel %vm391_vm6, %v389_v7, %v386_v6  ;;  %v419_v11 = vsel %vm418_vm8, %v605_v40, %v415_v18 }
 0x19a   :  { %v429_v58 = vmul.f32 %v427_v8, %v929_v61  ;;  %v394_v16 = vsub.f32 %v372_v15, %v392_v27  ;;  %v424_v48 = vsel %vm421_vm9, %v423_v17, %v419_v11 }
 0x19c   :  { %v431_v13 = vmax.f32 %v429_v58, 1e-15  ;;  %v396_v20 = vmul.f32 0.5, %v394_v16 }
 0x19e   :  { %v433_v21 = vmul.f32 %v431_v13, %v736_v39  ;;  %v426_v22 = vmul.f32 %v424_v48, %v396_v20 }
 0x1a0   :  { %v428_v24 = vmul.f32 %v426_v22, %v892_v4  ;;  %610 = vrcp.f32 %v433_v21  ;;  %v448_v37 = vand.u32 2147483648, %v433_v21  ;;  %v446_v40 = vand.u32 2147483647, %v433_v21 }
 0x1a1   :  { %vm442_vm13 = vweird.f32 %v433_v21 }
 0x1a2   :  { %v430_v29 = vmul.f32 %v428_v24, %v184_v26  ;;  %v449_v42 = vor.u32 1.1754944e-38, %v448_v37  ;;  %vm447_vm15 = vcmp.eq.f32.partialorder %v446_v40, 8.507059e+37 }
 0x1a4   :  { %v432_v31 = vmax.f32 %v430_v29, 1e-15 }
 0x1a6   :  { %v611_v32 = vpop.eup %610  ;;  %v434_v25 = vmul.f32 %v432_v31, %v736_v39 }
 0x1a7   :  { %v438_v33 = vmul.f32 %v611_v32, %v433_v21  ;;  %vm443_vm12 = vweird.f32 %v611_v32 }
 0x1a8   :  { %612 = vrcp.f32 %v434_v25  ;;  %vm444_vm14 = vmor %vm442_vm13, %vm443_vm12  ;;  %v462_v47 = vand.u32 2147483648, %v434_v25  ;;  %v460_v50 = vand.u32 2147483647, %v434_v25  ;;  %vm456_vm2 = vweird.f32 %v434_v25 }
 0x1a9   :  { %v439_v34 = vsub.f32 1.0, %v438_v33  ;;  %614 = vtanh.f32 %v433_v21 }
 0x1aa   :  { %616 = vtanh.f32 %v434_v25  ;;  %v463_v53 = vor.u32 1.1754944e-38, %v462_v47  ;;  %vm461_vm3 = vcmp.eq.f32.partialorder %v460_v50, 8.507059e+37 }
 0x1ab   :  { %v440_v38 = vmul.f32 %v611_v32, %v439_v34 }
 0x1ad   :  { %v441_v41 = vadd.f32 %v611_v32, %v440_v38 }
 0x1ae   :  { %v613_v4 = vpop.eup %612 }
 0x1af   :  { %v445_v19 = vsel %vm444_vm14, %v611_v32, %v441_v41  ;;  %v615_v43 = vpop.eup %614  ;;  %v452_v45 = vmul.f32 %v613_v4, %v434_v25  ;;  %vm457_vm0 = vweird.f32 %v613_v4 }
 0x1b0   :  { %v450_v44 = vsel %vm447_vm15, %v449_v42, %v445_v19  ;;  %vm458_vm1 = vmor %vm456_vm2, %vm457_vm0  ;;  %v617_v56 = vpop.eup %616 }
 0x1b1   :  { %v465_v46 = vmul.f32 %v615_v43, %v450_v44  ;;  %v453_v39 = vsub.f32 1.0, %v452_v45 }
 0x1b3   :  { %v467_v12 = vmul.f32 %v465_v46, %v427_v8  ;;  %v454_v49 = vmul.f32 %v613_v4, %v453_v39 }
 0x1b5   :  { %v469_v51 = vmul.f32 %v467_v12, %v929_v61  ;;  %v455_v52 = vadd.f32 %v613_v4, %v454_v49 }
 0x1b7   :  { %v471_v54 = vmax.f32 %v469_v51, 1e-15  ;;  %v459_v55 = vsel %vm458_vm1, %v613_v4, %v455_v52 }
 0x1b8   :  { %v464_v57 = vsel %vm461_vm3, %v463_v53, %v459_v55 }
 0x1b9   :  { %618 = vrcp.f32 %v471_v54  ;;  %v466_v59 = vmul.f32 %v617_v56, %v464_v57  ;;  %v486_v2 = vand.u32 2147483648, %v471_v54  ;;  %v484_v3 = vand.u32 2147483647, %v471_v54 }
 0x1ba   :  { %vm480_vm5 = vweird.f32 %v471_v54  ;;  %vm473_vm8 = vcmp.gt.f32.partialorder %v471_v54, %v871_v35 }
 0x1bb   :  { %v468_v60 = vmul.f32 %v466_v59, %v428_v24  ;;  %v487_v6 = vor.u32 1.1754944e-38, %v486_v2  ;;  %vm485_vm7 = vcmp.eq.f32.partialorder %v484_v3, 8.507059e+37 }
 0x1bd   :  { %v470_v28 = vmul.f32 %v468_v60, %v184_v26 }
 0x1bf   :  { %v619_v62 = vpop.eup %618  ;;  %v472_v63 = vmax.f32 %v470_v28, 1e-15 }
 0x1c0   :  { %v476_v0 = vmul.f32 %v619_v62, %v471_v54  ;;  %vm481_vm4 = vweird.f32 %v619_v62 }
 0x1c1   :  { %620 = vrcp.f32 %v472_v63  ;;  %vm482_vm6 = vmor %vm480_vm5, %vm481_vm4  ;;  %v500_v58 = vand.u32 2147483648, %v472_v63  ;;  %v498_v11 = vand.u32 2147483647, %v472_v63  ;;  %vm494_vm10 = vweird.f32 %v472_v63 }
 0x1c2   :  { %v477_v1 = vsub.f32 1.0, %v476_v0  ;;  %vm474_vm13 = vcmp.gt.f32.partialorder %v472_v63, %v871_v35 }
 0x1c3   :  { %v501_v48 = vor.u32 1.1754944e-38, %v500_v58  ;;  %vm499_vm12 = vcmp.eq.f32.partialorder %v498_v11, 8.507059e+37 }
 0x1c4   :  { %v478_v61 = vmul.f32 %v619_v62, %v477_v1 }
 0x1c6   :  { %v479_v5 = vadd.f32 %v619_v62, %v478_v61 }
 0x1c7   :  { %v621_v7 = vpop.eup %620 }
 0x1c8   :  { %v483_v18 = vsel %vm482_vm6, %v619_v62, %v479_v5  ;;  %v490_v10 = vmul.f32 %v621_v7, %v472_v63  ;;  %vm495_vm9 = vweird.f32 %v621_v7 }
 0x1c9   :  { %v488_v8 = vsel %vm485_vm7, %v487_v6, %v483_v18  ;;  %vm496_vm11 = vmor %vm494_vm10, %vm495_vm9 }
 0x1ca   :  { %v503_v15 = vmul.f32 %v488_v8, %v871_v35  ;;  %v491_v27 = vsub.f32 1.0, %v490_v10 }
 0x1cc   :  { %v505_v14 = vsel %vm473_vm8, %v503_v15, 1.0  ;;  %v492_v16 = vmul.f32 %v621_v7, %v491_v27 }
 0x1cd   :  { %v507_v17 = vmul.f32 %v505_v14, %v467_v12 }
 0x1ce   :  { %v493_v13 = vadd.f32 %v621_v7, %v492_v16 }
 0x1cf   :  { %v509_v20 = vmul.f32 %v507_v17, %v728_v30 }
 0x1d0   :  { %v497_v21 = vsel %vm496_vm11, %v621_v7, %v493_v13 }
 0x1d1   :  { %511 = vst [vmem:[#allocation3] sm:$0xff] %v509_v20  ;;  %v502_v9 = vsel %vm499_vm12, %v501_v48, %v497_v21 }
 0x1d2   :  { %v504_v22 = vmul.f32 %v502_v9, %v871_v35 }
 0x1d4   :  { %v506_v23 = vsel %vm474_vm13, %v504_v22, 1.0 }
 0x1d5   :  { %v508_v24 = vmul.f32 %v506_v23, %v468_v60 }
 0x1d7   :  { %v510_v30 = vmul.f32 %v508_v24, %v732_v36 }
 0x1d9   :  { %512 = vst [vmem:[#allocation3 + $0x8] sm:$0xff] %v510_v30 }
 0x1da   :  { %525 = dma.vmem_to_hbm [thread:$0]  %s518_s24, 256, %s520_s27, [#allocation4], %s649_s28, %s649_s28, %s650_s29  }
 0x1db   :  { %646 = dma.done.wait [#allocation4], 256  }
 0x1dc   :  { %647 = vsyncadd [#allocation4], 4294967040 }
 0x1dd   :  { %530 = vsyncpa [#allocation4], 1 }

</bundles_post_ra>
